<compile_context>
chip_gen: v5e
topology: v5e:2x2
jax: 0.10.0
libtpu: 0.0.40
codegen_flags: <defaults>
</compile_context>

<pallas_src>
import functools

import jax
import jax.numpy as jnp
import numpy as np
from jax.experimental import pallas as pl
from jax.experimental.pallas import tpu as pltpu


def dummy_model_kernel(x_ref, w1_ref, b1_ref, mask_ref, wft_ref, bft_ref, out_ref,
                       *, wp, q):
    """One grid step processes `ib` whole images.

    x_ref   : (ib, Cin, Npad) bf16  flattened 0.5-padded channel planes
    w1_ref  : (9, C1, Cin)    bf16  folded conv1 tap matrices, t = ky*3 + kx
    b1_ref  : (C1, 1)         f32   folded conv1 bias
    mask_ref: (1, Q)          f32   1.0 on valid output slots, 0.0 on row-pad junk
    wft_ref : (NCp, C1)       f32   (w2 @ wc)^T / (H*W)   (GAP folded in)
    bft_ref : (NCp, 1)        f32   (b2 @ wc + bc)^T
    out_ref : (ib, NCp, 1)    f32   per-image logit column
    """
    ib = x_ref.shape[0]
    shifts = [ky * wp + kx for ky in range(3) for kx in range(3)]
    mask = mask_ref[...]                                    # (1, Q)
    b1 = b1_ref[...]                                        # (C1, 1)

    for i in range(ib):                                     # unrolled; ib is small
        x = x_ref[i]                                        # (Cin, Npad) bf16, lane-dense
        acc = None
        for t, s in enumerate(shifts):
            # 3x3 tap (ky,kx) == static lane shift by ky*Wp+kx of the flat padded plane.
            part = jnp.dot(w1_ref[t], x[:, s:s + q],
                           preferred_element_type=jnp.float32)      # (C1, Q) f32 on MXU
            acc = part if acc is None else acc + part
        h = jnp.maximum(acc + b1, 0.0) * mask               # ReLU, zero the junk slots
        pooled = jnp.sum(h, axis=1, keepdims=True)          # (C1, 1) spatial sum (XLU)
        logit = jnp.dot(wft_ref[...], pooled,
                        preferred_element_type=jnp.float32) + bft_ref[...]   # (NCp, 1)
        out_ref[i] = logit


def init_params(key, num_classes=1, dim_embedding=16, cin=3):
    k1, k2, k3, k4, k5, k6 = jax.random.split(key, 6)
    return {
        # conv1 weights stored HWIO: (KH, KW, Cin, Cout)
        "w1": 0.1 * jax.random.normal(k1, (3, 3, cin, 16), jnp.float32),
        "b1": 0.1 * jax.random.normal(k2, (1, 16), jnp.float32),
        "w2": 0.1 * jax.random.normal(k3, (16, dim_embedding), jnp.float32),
        "b2": 0.1 * jax.random.normal(k4, (1, dim_embedding), jnp.float32),
        "wc": 0.1 * jax.random.normal(k5, (dim_embedding, num_classes), jnp.float32),
        "bc": 0.1 * jax.random.normal(k6, (1, num_classes), jnp.float32),
    }


def fold_and_pack_params(params):
    """One-time host-side transform: fold normalization into conv1, fuse conv2(1x1) and
    the classifier across the (linear) global average pool, pad to TPU-friendly shapes."""
    kh, kw, cin, c1 = params["w1"].shape
    assert kh == 3 and kw == 3
    # (x-0.5)/0.5 == 2x-1  ->  fold into conv1. Tap-major (ky,kx) matrices of shape (C1,Cin).
    w1t = jnp.transpose(2.0 * params["w1"], (0, 1, 3, 2)).reshape(kh * kw, c1, cin)
    w1t = w1t.astype(jnp.bfloat16)
    b1f = params["b1"].reshape(c1) - jnp.sum(params["w1"], axis=(0, 1, 2))
    b1f = b1f.reshape(c1, 1).astype(jnp.float32)

    wf = params["w2"] @ params["wc"]                        # (c1, nc)
    bf = params["b2"] @ params["wc"] + params["bc"]         # (1, nc)
    nc = wf.shape[1]
    nc_p = max(8, ((nc + 7) // 8) * 8)                      # sublane-pad the tiny output
    wft = jnp.pad(wf.T, ((0, nc_p - nc), (0, 0))).astype(jnp.float32)    # (nc_p, c1)
    bft = jnp.pad(bf.T, ((0, nc_p - nc), (0, 0))).astype(jnp.float32)    # (nc_p, 1)
    return {"w1t": w1t, "b1": b1f, "wft": wft, "bft": bft,
            "cin": cin, "c1": c1, "num_classes": nc, "nc_pad": nc_p}


def _pick_images_per_block(batch, bytes_per_image, target_bytes=512 << 10, max_ib=8):
    """Pack enough images per grid step that the DMA dwarfs the ~0.35us step overhead,
    but keep >= 2 grid steps when B >= 2 so both v7x TensorCores get work."""
    ib = max(1, int(target_bytes) // max(1, int(bytes_per_image)))
    ib = min(ib, batch, max_ib)
    if batch >= 2:
        ib = min(ib, (batch + 1) // 2)
    return max(ib, 1)


def dummy_model_forward(x, fparams):
    """x: (B, 3, H, W) float32 (NCHW, like PyTorch). Returns {'out_logit': (B, num_classes)}."""
    B, Cin, H, W = x.shape
    assert Cin == fparams["cin"]
    c1, nc, nc_p = fparams["c1"], fparams["num_classes"], fparams["nc_pad"]
    Hp, Wp = H + 2, W + 2
    Q = H * Wp                                              # output slots (incl. 2 junk cols/row)
    Npad = ((Hp * Wp + 2 + 127) // 128) * 128               # flat plane, room for max tap shift

    # ---- cheap glue: 0.5-pad + flatten the raw NCHW planes in bf16 (no im2col). ----
    xb = x.astype(jnp.bfloat16)                             # 0.5 is exact in bf16
    xp = jnp.pad(xb, ((0, 0), (0, 0), (1, 1), (1, 1)), constant_values=0.5)
    xf = xp.reshape(B, Cin, Hp * Wp)
    xf = jnp.pad(xf, ((0, 0), (0, 0), (0, Npad - Hp * Wp)))

    ib = _pick_images_per_block(B, Cin * Npad * 2)
    nblk = -(-B // ib)
    B_pad = nblk * ib
    if B_pad != B:
        xf = jnp.pad(xf, ((0, B_pad - B), (0, 0), (0, 0)))

    # valid-output mask over the Q flat slots (junk = the 2 padded columns of each row).
    mask = jnp.asarray(((np.arange(Q) % Wp) < W).astype(np.float32)).reshape(1, Q)
    # fold the GAP's 1/P into the fused classifier weights (bias is unaffected).
    wft = fparams["wft"] * (1.0 / float(H * W))

    kernel = functools.partial(dummy_model_kernel, wp=Wp, q=Q)

    # Explicit VMEM budget: input double-buffers + conv accumulator temporaries + slack.
    est_vmem = (4 * ib * Cin * Npad * 2) + (3 * c1 * Q * 4) + (Q * 4) + (2 << 20)
    cp_kwargs = dict(dimension_semantics=("parallel",))
    if est_vmem > (24 << 20):
        cp_kwargs["vmem_limit_bytes"] = int(min(est_vmem, 48 << 20))

    out = pl.pallas_call(
        kernel,
        out_shape=jax.ShapeDtypeStruct((B_pad, nc_p, 1), jnp.float32),
        grid=(nblk,),
        in_specs=[
            pl.BlockSpec((ib, Cin, Npad), lambda g: (g, 0, 0)),   # per-block image planes
            pl.BlockSpec((9, c1, Cin), lambda g: (0, 0, 0)),      # resident weights
            pl.BlockSpec((c1, 1), lambda g: (0, 0)),
            pl.BlockSpec((1, Q), lambda g: (0, 0)),
            pl.BlockSpec((nc_p, c1), lambda g: (0, 0)),
            pl.BlockSpec((nc_p, 1), lambda g: (0, 0)),
        ],
        out_specs=pl.BlockSpec((ib, nc_p, 1), lambda g: (g, 0, 0)),
        compiler_params=pltpu.CompilerParams(**cp_kwargs),
    )(xf, fparams["w1t"], fparams["b1"], mask, wft, fparams["bft"])

    return {"out_logit": out[:B, :nc, 0]}


def reference_forward(x, params):
    """Pure-JAX reference mirroring the PyTorch module exactly (f32, unfolded)."""
    xn = (x - 0.5) / 0.5                                          # NCHW
    xn = jnp.transpose(xn, (0, 2, 3, 1))                          # NHWC
    f = jax.lax.conv_general_dilated(
        xn, params["w1"], window_strides=(1, 1), padding="SAME",
        dimension_numbers=("NHWC", "HWIO", "NHWC")) + params["b1"].reshape(1, 1, 1, -1)
    f = jnp.maximum(f, 0.0)
    f = jnp.einsum("bhwc,cd->bhwd", f, params["w2"]) + params["b2"].reshape(1, 1, 1, -1)
    emb = jnp.mean(f, axis=(1, 2))                                # GAP -> (B, dim_emb)
    logits = emb @ params["wc"] + params["bc"]                    # (B, num_classes)
    return logits


if __name__ == "__main__":
    key = jax.random.PRNGKey(0)
    kx, kp = jax.random.split(key)

    B, Cin, H, W = 2, 3, 16, 16
    x = jax.random.uniform(kx, (B, Cin, H, W), jnp.float32)       # image-like in [0,1)
    params = init_params(kp, num_classes=1, dim_embedding=16, cin=Cin)
    fparams = fold_and_pack_params(params)                        # one-time weight transform

    out = dummy_model_forward(x, fparams)
    logits = jax.block_until_ready(out["out_logit"])

    ref = jax.block_until_ready(reference_forward(x, params))
    np.testing.assert_allclose(np.asarray(logits), np.asarray(ref), atol=1e-2, rtol=1e-2)

    # get_liveness_score (not part of forward): sigmoid of logits — plain JAX glue.
    _ = jax.nn.sigmoid(logits)

    print("KERNEL_OK")
</pallas_src>

<mosaic_0001>
module attributes {stable_mosaic.version = 11 : i64} {
  func.func @dummy_model_kernel(%arg0: i32, %arg1: memref<1x3x384xbf16, #tpu.memory_space<vmem>>, %arg2: memref<9x16x3xbf16, #tpu.memory_space<vmem>>, %arg3: memref<16x1xf32, #tpu.memory_space<vmem>>, %arg4: memref<1x288xf32, #tpu.memory_space<vmem>>, %arg5: memref<8x16xf32, #tpu.memory_space<vmem>>, %arg6: memref<8x1xf32, #tpu.memory_space<vmem>>, %arg7: memref<1x8x1xf32, #tpu.memory_space<vmem>>) attributes {dimension_semantics = [#tpu.dimension_semantics<parallel>], iteration_bounds = array<i64: 2>, scalar_prefetch = 0 : i64, scratch_operands = 0 : i64, tpu.core_type = #tpu.core_type<tc>, window_params = [{transform_indices = @transform_0, window_bounds = array<i64: 1, 3, 384>}, {pipeline_mode = #tpu.pipeline_mode<synchronous>, transform_indices = @transform_1, window_bounds = array<i64: 9, 16, 3>}, {pipeline_mode = #tpu.pipeline_mode<synchronous>, transform_indices = @transform_2, window_bounds = array<i64: 16, 1>}, {pipeline_mode = #tpu.pipeline_mode<synchronous>, transform_indices = @transform_3, window_bounds = array<i64: 1, 288>}, {pipeline_mode = #tpu.pipeline_mode<synchronous>, transform_indices = @transform_4, window_bounds = array<i64: 8, 16>}, {pipeline_mode = #tpu.pipeline_mode<synchronous>, transform_indices = @transform_5, window_bounds = array<i64: 8, 1>}, {transform_indices = @transform_6, window_bounds = array<i64: 1, 8, 1>}]} {
    %c0 = arith.constant 0 : index
    %c0_0 = arith.constant 0 : index
    %0 = vector.load %arg4[%c0, %c0_0] : memref<1x288xf32, #tpu.memory_space<vmem>>, vector<1x288xf32>
    %c0_1 = arith.constant 0 : index
    %c0_2 = arith.constant 0 : index
    %1 = vector.load %arg3[%c0_1, %c0_2] : memref<16x1xf32, #tpu.memory_space<vmem>>, vector<16x1xf32>
    %c0_3 = arith.constant 0 : index
    %c0_4 = arith.constant 0 : index
    %c0_5 = arith.constant 0 : index
    %2 = vector.load %arg1[%c0_3, %c0_4, %c0_5] : memref<1x3x384xbf16, #tpu.memory_space<vmem>>, vector<1x3x384xbf16>
    %3 = vector.shape_cast %2 : vector<1x3x384xbf16> to vector<3x384xbf16>
    %c0_6 = arith.constant 0 : index
    %c0_7 = arith.constant 0 : index
    %c0_8 = arith.constant 0 : index
    %4 = vector.load %arg2[%c0_6, %c0_7, %c0_8] : memref<9x16x3xbf16, #tpu.memory_space<vmem>>, vector<1x16x3xbf16>
    %5 = vector.shape_cast %4 : vector<1x16x3xbf16> to vector<16x3xbf16>
    %6 = vector.extract_strided_slice %3 {offsets = [0, 0], sizes = [3, 288], strides = [1, 1]} : vector<3x384xbf16> to vector<3x288xbf16>
    %cst = arith.constant dense<0.000000e+00> : vector<16x288xf32>
    %7 = tpu.matmul %5, %6, %cst {dimension_numbers = #tpu.dot_dimension_numbers<[1], [0], [0], [1], [0, 0, 1, 1], [], []>} : vector<16x3xbf16>, vector<3x288xbf16>, vector<16x288xf32> -> vector<16x288xf32>
    %c1 = arith.constant 1 : index
    %c0_9 = arith.constant 0 : index
    %c0_10 = arith.constant 0 : index
    %8 = vector.load %arg2[%c1, %c0_9, %c0_10] : memref<9x16x3xbf16, #tpu.memory_space<vmem>>, vector<1x16x3xbf16>
    %9 = vector.shape_cast %8 : vector<1x16x3xbf16> to vector<16x3xbf16>
    %10 = vector.extract_strided_slice %3 {offsets = [0, 1], sizes = [3, 288], strides = [1, 1]} : vector<3x384xbf16> to vector<3x288xbf16>
    %cst_11 = arith.constant dense<0.000000e+00> : vector<16x288xf32>
    %11 = tpu.matmul %9, %10, %cst_11 {dimension_numbers = #tpu.dot_dimension_numbers<[1], [0], [0], [1], [0, 0, 1, 1], [], []>} : vector<16x3xbf16>, vector<3x288xbf16>, vector<16x288xf32> -> vector<16x288xf32>
    %12 = arith.addf %7, %11 : vector<16x288xf32>
    %c2 = arith.constant 2 : index
    %c0_12 = arith.constant 0 : index
    %c0_13 = arith.constant 0 : index
    %13 = vector.load %arg2[%c2, %c0_12, %c0_13] : memref<9x16x3xbf16, #tpu.memory_space<vmem>>, vector<1x16x3xbf16>
    %14 = vector.shape_cast %13 : vector<1x16x3xbf16> to vector<16x3xbf16>
    %15 = vector.extract_strided_slice %3 {offsets = [0, 2], sizes = [3, 288], strides = [1, 1]} : vector<3x384xbf16> to vector<3x288xbf16>
    %cst_14 = arith.constant dense<0.000000e+00> : vector<16x288xf32>
    %16 = tpu.matmul %14, %15, %cst_14 {dimension_numbers = #tpu.dot_dimension_numbers<[1], [0], [0], [1], [0, 0, 1, 1], [], []>} : vector<16x3xbf16>, vector<3x288xbf16>, vector<16x288xf32> -> vector<16x288xf32>
    %17 = arith.addf %12, %16 : vector<16x288xf32>
    %c3 = arith.constant 3 : index
    %c0_15 = arith.constant 0 : index
    %c0_16 = arith.constant 0 : index
    %18 = vector.load %arg2[%c3, %c0_15, %c0_16] : memref<9x16x3xbf16, #tpu.memory_space<vmem>>, vector<1x16x3xbf16>
    %19 = vector.shape_cast %18 : vector<1x16x3xbf16> to vector<16x3xbf16>
    %20 = vector.extract_strided_slice %3 {offsets = [0, 18], sizes = [3, 288], strides = [1, 1]} : vector<3x384xbf16> to vector<3x288xbf16>
    %cst_17 = arith.constant dense<0.000000e+00> : vector<16x288xf32>
    %21 = tpu.matmul %19, %20, %cst_17 {dimension_numbers = #tpu.dot_dimension_numbers<[1], [0], [0], [1], [0, 0, 1, 1], [], []>} : vector<16x3xbf16>, vector<3x288xbf16>, vector<16x288xf32> -> vector<16x288xf32>
    %22 = arith.addf %17, %21 : vector<16x288xf32>
    %c4 = arith.constant 4 : index
    %c0_18 = arith.constant 0 : index
    %c0_19 = arith.constant 0 : index
    %23 = vector.load %arg2[%c4, %c0_18, %c0_19] : memref<9x16x3xbf16, #tpu.memory_space<vmem>>, vector<1x16x3xbf16>
    %24 = vector.shape_cast %23 : vector<1x16x3xbf16> to vector<16x3xbf16>
    %25 = vector.extract_strided_slice %3 {offsets = [0, 19], sizes = [3, 288], strides = [1, 1]} : vector<3x384xbf16> to vector<3x288xbf16>
    %cst_20 = arith.constant dense<0.000000e+00> : vector<16x288xf32>
    %26 = tpu.matmul %24, %25, %cst_20 {dimension_numbers = #tpu.dot_dimension_numbers<[1], [0], [0], [1], [0, 0, 1, 1], [], []>} : vector<16x3xbf16>, vector<3x288xbf16>, vector<16x288xf32> -> vector<16x288xf32>
    %27 = arith.addf %22, %26 : vector<16x288xf32>
    %c5 = arith.constant 5 : index
    %c0_21 = arith.constant 0 : index
    %c0_22 = arith.constant 0 : index
    %28 = vector.load %arg2[%c5, %c0_21, %c0_22] : memref<9x16x3xbf16, #tpu.memory_space<vmem>>, vector<1x16x3xbf16>
    %29 = vector.shape_cast %28 : vector<1x16x3xbf16> to vector<16x3xbf16>
    %30 = vector.extract_strided_slice %3 {offsets = [0, 20], sizes = [3, 288], strides = [1, 1]} : vector<3x384xbf16> to vector<3x288xbf16>
    %cst_23 = arith.constant dense<0.000000e+00> : vector<16x288xf32>
    %31 = tpu.matmul %29, %30, %cst_23 {dimension_numbers = #tpu.dot_dimension_numbers<[1], [0], [0], [1], [0, 0, 1, 1], [], []>} : vector<16x3xbf16>, vector<3x288xbf16>, vector<16x288xf32> -> vector<16x288xf32>
    %32 = arith.addf %27, %31 : vector<16x288xf32>
    %c6 = arith.constant 6 : index
    %c0_24 = arith.constant 0 : index
    %c0_25 = arith.constant 0 : index
    %33 = vector.load %arg2[%c6, %c0_24, %c0_25] : memref<9x16x3xbf16, #tpu.memory_space<vmem>>, vector<1x16x3xbf16>
    %34 = vector.shape_cast %33 : vector<1x16x3xbf16> to vector<16x3xbf16>
    %35 = vector.extract_strided_slice %3 {offsets = [0, 36], sizes = [3, 288], strides = [1, 1]} : vector<3x384xbf16> to vector<3x288xbf16>
    %cst_26 = arith.constant dense<0.000000e+00> : vector<16x288xf32>
    %36 = tpu.matmul %34, %35, %cst_26 {dimension_numbers = #tpu.dot_dimension_numbers<[1], [0], [0], [1], [0, 0, 1, 1], [], []>} : vector<16x3xbf16>, vector<3x288xbf16>, vector<16x288xf32> -> vector<16x288xf32>
    %37 = arith.addf %32, %36 : vector<16x288xf32>
    %c7 = arith.constant 7 : index
    %c0_27 = arith.constant 0 : index
    %c0_28 = arith.constant 0 : index
    %38 = vector.load %arg2[%c7, %c0_27, %c0_28] : memref<9x16x3xbf16, #tpu.memory_space<vmem>>, vector<1x16x3xbf16>
    %39 = vector.shape_cast %38 : vector<1x16x3xbf16> to vector<16x3xbf16>
    %40 = vector.extract_strided_slice %3 {offsets = [0, 37], sizes = [3, 288], strides = [1, 1]} : vector<3x384xbf16> to vector<3x288xbf16>
    %cst_29 = arith.constant dense<0.000000e+00> : vector<16x288xf32>
    %41 = tpu.matmul %39, %40, %cst_29 {dimension_numbers = #tpu.dot_dimension_numbers<[1], [0], [0], [1], [0, 0, 1, 1], [], []>} : vector<16x3xbf16>, vector<3x288xbf16>, vector<16x288xf32> -> vector<16x288xf32>
    %42 = arith.addf %37, %41 : vector<16x288xf32>
    %c8 = arith.constant 8 : index
    %c0_30 = arith.constant 0 : index
    %c0_31 = arith.constant 0 : index
    %43 = vector.load %arg2[%c8, %c0_30, %c0_31] : memref<9x16x3xbf16, #tpu.memory_space<vmem>>, vector<1x16x3xbf16>
    %44 = vector.shape_cast %43 : vector<1x16x3xbf16> to vector<16x3xbf16>
    %45 = vector.extract_strided_slice %3 {offsets = [0, 38], sizes = [3, 288], strides = [1, 1]} : vector<3x384xbf16> to vector<3x288xbf16>
    %cst_32 = arith.constant dense<0.000000e+00> : vector<16x288xf32>
    %46 = tpu.matmul %44, %45, %cst_32 {dimension_numbers = #tpu.dot_dimension_numbers<[1], [0], [0], [1], [0, 0, 1, 1], [], []>} : vector<16x3xbf16>, vector<3x288xbf16>, vector<16x288xf32> -> vector<16x288xf32>
    %47 = arith.addf %42, %46 : vector<16x288xf32>
    %48 = vector.broadcast %1 : vector<16x1xf32> to vector<16x288xf32>
    %49 = arith.addf %47, %48 : vector<16x288xf32>
    %cst_33 = arith.constant 0.000000e+00 : f32
    %50 = vector.broadcast %cst_33 : f32 to vector<16x288xf32>
    %51 = arith.maximumf %49, %50 : vector<16x288xf32>
    %52 = vector.broadcast %0 : vector<1x288xf32> to vector<16x288xf32>
    %53 = arith.mulf %51, %52 : vector<16x288xf32>
    %cst_34 = arith.constant dense<0.000000e+00> : vector<16xf32>
    %54 = vector.multi_reduction <add>, %53, %cst_34 [1] : vector<16x288xf32> to vector<16xf32>
    %55 = vector.shape_cast %54 : vector<16xf32> to vector<16x1xf32>
    %c0_35 = arith.constant 0 : index
    %c0_36 = arith.constant 0 : index
    %56 = vector.load %arg5[%c0_35, %c0_36] : memref<8x16xf32, #tpu.memory_space<vmem>>, vector<8x16xf32>
    %cst_37 = arith.constant dense<0.000000e+00> : vector<8x1xf32>
    %57 = tpu.matmul %56, %55, %cst_37 {dimension_numbers = #tpu.dot_dimension_numbers<[1], [0], [0], [1], [0, 0, 1, 1], [], []>} : vector<8x16xf32>, vector<16x1xf32>, vector<8x1xf32> -> vector<8x1xf32>
    %c0_38 = arith.constant 0 : index
    %c0_39 = arith.constant 0 : index
    %58 = vector.load %arg6[%c0_38, %c0_39] : memref<8x1xf32, #tpu.memory_space<vmem>>, vector<8x1xf32>
    %59 = arith.addf %57, %58 : vector<8x1xf32>
    %c0_40 = arith.constant 0 : index
    %c0_41 = arith.constant 0 : index
    %c0_42 = arith.constant 0 : index
    %60 = vector.load %arg7[%c0_40, %c0_41, %c0_42] : memref<1x8x1xf32, #tpu.memory_space<vmem>>, vector<1x8x1xf32>
    %61 = vector.shape_cast %60 : vector<1x8x1xf32> to vector<8x1xf32>
    %62 = vector.shape_cast %59 : vector<8x1xf32> to vector<1x8x1xf32>
    tpu.vector_store %arg7[%c0_40, %c0_41, %c0_42], %62 {strides = array<i32>} : memref<1x8x1xf32, #tpu.memory_space<vmem>>, vector<1x8x1xf32>,
    return
  }
  func.func @transform_0(%arg0: i32) -> (i32, i32, i32) {
    %c0_i32 = arith.constant 0 : i32
    %c0_i32_0 = arith.constant 0 : i32
    %c0_i32_1 = arith.constant 0 : i32
    return %arg0, %c0_i32, %c0_i32_0 : i32, i32, i32
  }
  func.func @transform_1(%arg0: i32) -> (i32, i32, i32) {
    %c0_i32 = arith.constant 0 : i32
    %c0_i32_0 = arith.constant 0 : i32
    %c0_i32_1 = arith.constant 0 : i32
    %c0_i32_2 = arith.constant 0 : i32
    return %c0_i32, %c0_i32_0, %c0_i32_1 : i32, i32, i32
  }
  func.func @transform_2(%arg0: i32) -> (i32, i32) {
    %c0_i32 = arith.constant 0 : i32
    %c0_i32_0 = arith.constant 0 : i32
    %c0_i32_1 = arith.constant 0 : i32
    return %c0_i32, %c0_i32_0 : i32, i32
  }
  func.func @transform_3(%arg0: i32) -> (i32, i32) {
    %c0_i32 = arith.constant 0 : i32
    %c0_i32_0 = arith.constant 0 : i32
    %c0_i32_1 = arith.constant 0 : i32
    return %c0_i32, %c0_i32_0 : i32, i32
  }
  func.func @transform_4(%arg0: i32) -> (i32, i32) {
    %c0_i32 = arith.constant 0 : i32
    %c0_i32_0 = arith.constant 0 : i32
    %c0_i32_1 = arith.constant 0 : i32
    return %c0_i32, %c0_i32_0 : i32, i32
  }
  func.func @transform_5(%arg0: i32) -> (i32, i32) {
    %c0_i32 = arith.constant 0 : i32
    %c0_i32_0 = arith.constant 0 : i32
    %c0_i32_1 = arith.constant 0 : i32
    return %c0_i32, %c0_i32_0 : i32, i32
  }
  func.func @transform_6(%arg0: i32) -> (i32, i32, i32) {
    %c0_i32 = arith.constant 0 : i32
    %c0_i32_0 = arith.constant 0 : i32
    %c0_i32_1 = arith.constant 0 : i32
    return %arg0, %c0_i32, %c0_i32_0 : i32, i32, i32
  }
}

</mosaic_0001>

<bundles_post_ra>
// kernel: tpu_custom_call.1
= control target key start
LH: loop header
LB: loop body
LE: loop exit
PB: predicated region body
PF: predicated region fallthrough
CT: control target
= control target key end

     0   :  { %s1288_s21 = smov 0   ;;  %s1422_s0 = inlined_call_operand.vmem [shape: bf16[2,3,384], index: 0, kind: input, shape index: {}]   ;;  %s1423_s1 = inlined_call_operand.vmem [shape: bf16[9,16,3], index: 1, kind: input, shape index: {}]   ;;  %s1424_s2 = inlined_call_operand.vmem [shape: f32[16,1], index: 2, kind: input, shape index: {}]   ;;  %s1425_s3 = inlined_call_operand.vmem [shape: f32[1,288], index: 3, kind: input, shape index: {}]   ;;  %s1426_s4 = inlined_call_operand.vmem [shape: f32[8,16], index: 4, kind: input, shape index: {}]   ;;  %s1427_s5 = inlined_call_operand.vmem [shape: f32[8,1], index: 5, kind: input, shape index: {}]   ;;  %s1428_s6 = inlined_call_operand.vmem [shape: f32[2,8,1], index: 6, kind: output, shape index: {}]  }
   0x1 LB: > { %s1116_s22 = sadd.s32 4294967295, %s1241_s21   ;;  %p1120_p0 = scmp.ge.s32.totalorder %s1241_s21, 1  ;;  %s1241_s21 = sphi %s1288_s21, %s16_s21  }
   0x2   : > { %p212_p1 = scmp.lt.s32.totalorder %s1241_s21, 3 }
   0x4   : > { %p213_p2 = pnand %p1120_p0, %p212_p1 }
   0x5   : > { %p241_p3 = scmp.lt.s32.totalorder (!%p213_p2), %s1116_s22, 1  ;;  %s1243_s27 = smov (!%p213_p2), 127  }
   0x6   : > { %216 = sbr.rel (%p213_p2) target bundleno = 649 (0x289), region = 44  ;;  %s1244_s28 = smov (!%p213_p2), 126  }
   0x7   : > { %s1245_s29 = smov (!%p213_p2), 110   ;;  %s1246_s30 = smov (!%p213_p2), 109  }
   0x8   : > { %s1247_s7 = smov (!%p213_p2), 108   ;;  %s1248_s8 = smov (!%p213_p2), 92  }
   0x9   : > { %s1249_s9 = smov (!%p213_p2), 91   ;;  %s1250_s10 = smov (!%p213_p2), 90  }
   0xb   : > { %s1430_s22 = smov (!%p241_p3, %s1116_s22), 1  ;;  %vm286_vm0 = vcmask 1040384   ;;  %vm287_vm1 = vcmask 1041408   ;;  %v1251_v27 = vmov 65535   ;;  %v1205_v32 = vld [vmem:[%s1423_s1] sm:$0xff]  ;;  %vm282_vm2 = vcmask 23552  }
   0xc   : > { %s1214_s23 = smul.u32 6, %s1430_s22  ;;  %v288_v28 = vsel %vm286_vm0, 4294967295, %v1251_v27  ;;  %vm279_vm3 = vcmask 1039360   ;;  %v1206_v40 = vld [vmem:[%s1423_s1 + $0x8] sm:$0xff]  ;;  %vm422_vm4 = vcmask 1031168   ;;  %v1207_v44 = vld [vmem:[%s1423_s1 + $0x10] sm:$0xff] }
   0xd   : > { %v1308_v29 = vsel %vm287_vm1, %v288_v28, 0  ;;  %vm506_vm5 = vcmask 900096   ;;  %v1208_v61 = vld [vmem:[%s1423_s1 + $0x18] sm:$0xff]  ;;  %vm590_vm6 = vcmask 891904   ;;  %vm674_vm7 = vcmask 883712   ;;  %s1122_s15 = sshll.u32 %s1430_s22, 3 }
   0xe   : > { %s245_s26 = scalar_lea.vmem %s1422_s0, %s1214_s23  ;;  %vm758_vm8 = vcmask 752640   ;;  %vm842_vm9 = vcmask 744448   ;;  %vm926_vm10 = vcmask 736256   ;;  %vm1025_vm11 = vcmask 261120   ;;  %s249_s20 = scalar_lea.vmem %s1428_s6, %s1122_s15 }
   0xf   : > { %v254_v0 = vld [vmem:[%s245_s26] sm:$0x3f]  ;;  %vm1037_vm12 = vcmask 130048   ;;  %vm1061_vm13 = vcmask 7168  }
  0x10   : > { %266 = vst [vmem:[#allocation1] ss:$4 sm:$0xff] %v254_v0 }
  0x17   : > { %v271_v1 = vld.sshfl [vmem:[#allocation1 + $0x10] sm:$0xff pattern:$0x73625140]  ;;  %v269_v2 = vld.sshfl [vmem:[#allocation1 + $0x8] sm:$0xff pattern:$0x73625140] }
  0x18   : > { %277 = vrot.lane.b32.xlu0 %v271_v1, %s1243_s27  ;;  %275 = vrot.lane.b32.xlu1 %v269_v2, %s1243_s27  ;;  %v267_v3 = vld.sshfl [vmem:[#allocation1] sm:$0xff pattern:$0x73625140] }
  0x19   : > { %346 = vst [vmem:[#allocation1] ss:$4 sm:$0xff] %v254_v0 }
  0x20   : > { %273 = vrot.lane.b32.xlu0 %v267_v3, %s1243_s27  ;;  %v1302_v4 = vld.sshfl [vmem:[#allocation1] sm:$0xff pattern:$0x73625140]  ;;  %v1304_v5 = vld.sshfl [vmem:[#allocation1 + $0x8] sm:$0xff pattern:$0x73625140] }
  0x21   : > { %v1306_v6 = vld.sshfl [vmem:[#allocation1 + $0x10] sm:$0xff pattern:$0x73625140]  ;;  %v353_v31 = vand.u32 %v1302_v4, %v1308_v29  ;;  %v355_v47 = vand.u32 %v1304_v5, %v1308_v29 }
  0x22   : > { %409 = vst [vmem:[#allocation1] ss:$4 sm:$0xff] %v254_v0  ;;  %v357_v38 = vand.u32 %v1306_v6, %v1308_v29 }
  0x23   : > { %366 = vmatpush.bf16.msra.mxu3 %v353_v31  ;;  %v1211_v31 = vld [vmem:[%s1423_s1 + $0x30] sm:$0xff] }
  0x26   : > { %1136 = vmatmul.msk.bf16.vlgmr.msra.gmra.mxu3 %vm282_vm2, %v1205_v32 }
  0x29   : > { %v410_v7 = vld.sshfl [vmem:[#allocation1] sm:$0xff pattern:$0x73625140]  ;;  %v412_v8 = vld.sshfl [vmem:[#allocation1 + $0x8] sm:$0xff pattern:$0x73625140] }
  0x2a   : > { %416 = vrot.lane.b32.xlu1 %v410_v7, %s1244_s28  ;;  %v414_v9 = vld.sshfl [vmem:[#allocation1 + $0x10] sm:$0xff pattern:$0x73625140]  ;;  %418 = vrot.lane.b32.xlu2 %v412_v8, %s1244_s28 }
  0x2b   : > { %493 = vst [vmem:[#allocation1] ss:$4 sm:$0xff] %v254_v0 }
  0x32   : > { %v498_v10 = vld.sshfl [vmem:[#allocation1 + $0x10] sm:$0xff pattern:$0x73625140]  ;;  %v494_v11 = vld.sshfl [vmem:[#allocation1] sm:$0xff pattern:$0x73625140]  ;;  %420 = vrot.lane.b32.xlu2 %v414_v9, %s1244_s28 }
  0x33   : > { %504 = vrot.lane.b32.xlu1 %v498_v10, %s1245_s29  ;;  %v496_v12 = vld.sshfl [vmem:[#allocation1 + $0x8] sm:$0xff pattern:$0x73625140] }
  0x34   : > { %502 = vrot.lane.b32.xlu0 %v496_v12, %s1245_s29  ;;  %577 = vst [vmem:[#allocation1] ss:$4 sm:$0xff] %v254_v0  ;;  %v1209_v12 = vld [vmem:[%s1423_s1 + $0x20] sm:$0xff] }
  0x3a   : > { %500 = vrot.lane.b32.xlu2 %v494_v11, %s1245_s29  ;;  %v1210_v11 = vld [vmem:[%s1423_s1 + $0x28] sm:$0xff] }
  0x3b   : > { %v582_v13 = vld.sshfl [vmem:[#allocation1 + $0x10] sm:$0xff pattern:$0x73625140]  ;;  %v580_v14 = vld.sshfl [vmem:[#allocation1 + $0x8] sm:$0xff pattern:$0x73625140] }
  0x3c   : > { %588 = vrot.lane.b32.xlu0 %v582_v13, %s1246_s30  ;;  %v578_v15 = vld.sshfl [vmem:[#allocation1] sm:$0xff pattern:$0x73625140] }
  0x3d   : > { %584 = vrot.lane.b32.xlu1 %v578_v15, %s1246_s30  ;;  %661 = vst [vmem:[#allocation1] ss:$4 sm:$0xff] %v254_v0 }
  0x42   : > { %586 = vrot.lane.b32.xlu2 %v580_v14, %s1246_s30 }
  0x44   : > { %v664_v16 = vld.sshfl [vmem:[#allocation1 + $0x8] sm:$0xff pattern:$0x73625140]  ;;  %v662_v17 = vld.sshfl [vmem:[#allocation1] sm:$0xff pattern:$0x73625140] }
  0x45   : > { %670 = vrot.lane.b32.xlu1 %v664_v16, %s1247_s7  ;;  %668 = vrot.lane.b32.xlu0 %v662_v17, %s1247_s7  ;;  %v666_v18 = vld.sshfl [vmem:[#allocation1 + $0x10] sm:$0xff pattern:$0x73625140] }
  0x46   : > { %745 = vst [vmem:[#allocation1] ss:$4 sm:$0xff] %v254_v0 }
  0x4d   : > { %672 = vrot.lane.b32.xlu1 %v666_v18, %s1247_s7  ;;  %v746_v19 = vld.sshfl [vmem:[#allocation1] sm:$0xff pattern:$0x73625140]  ;;  %v750_v20 = vld.sshfl [vmem:[#allocation1 + $0x10] sm:$0xff pattern:$0x73625140] }
  0x4e   : > { %v748_v21 = vld.sshfl [vmem:[#allocation1 + $0x8] sm:$0xff pattern:$0x73625140]  ;;  %752 = vrot.lane.b32.xlu2 %v746_v19, %s1248_s8 }
  0x4f   : > { %754 = vrot.lane.b32.xlu0 %v748_v21, %s1248_s8  ;;  %829 = vst [vmem:[#allocation1] ss:$4 sm:$0xff] %v254_v0 }
  0x56   : > { %v830_v22 = vld.sshfl [vmem:[#allocation1] sm:$0xff pattern:$0x73625140]  ;;  %v834_v23 = vld.sshfl [vmem:[#allocation1 + $0x10] sm:$0xff pattern:$0x73625140]  ;;  %756 = vrot.lane.b32.xlu2 %v750_v20, %s1248_s8 }
  0x57   : > { %840 = vrot.lane.b32.xlu1 %v834_v23, %s1249_s9  ;;  %v832_v24 = vld.sshfl [vmem:[#allocation1 + $0x8] sm:$0xff pattern:$0x73625140] }
  0x58   : > { %838 = vrot.lane.b32.xlu0 %v832_v24, %s1249_s9  ;;  %913 = vst [vmem:[#allocation1] ss:$4 sm:$0xff] %v254_v0 }
  0x5e   : > { %836 = vrot.lane.b32.xlu2 %v830_v22, %s1249_s9 }
  0x5f   : > { %v918_v25 = vld.sshfl [vmem:[#allocation1 + $0x10] sm:$0xff pattern:$0x73625140]  ;;  %v914_v26 = vld.sshfl [vmem:[#allocation1] sm:$0xff pattern:$0x73625140] }
  0x60   : > { %924 = vrot.lane.b32.xlu0 %v918_v25, %s1250_s10  ;;  %920 = vrot.lane.b32.xlu1 %v914_v26, %s1250_s10  ;;  %v916_v30 = vld.sshfl [vmem:[#allocation1 + $0x8] sm:$0xff pattern:$0x73625140] }
  0x66   : > { %922 = vrot.lane.b32.xlu2 %v916_v30, %s1250_s10 }
  0x84   : > { %v419_v33 = vpop.permute.xlu2 %418 }
  0x8a   : > { %v278_v34 = vpop.permute.xlu0 %277  ;;  %v276_v35 = vpop.permute.xlu1 %275 }
  0x8b   : > { %v297_v36 = vand.u32 %v1308_v29, %v278_v34  ;;  %v281_v37 = vsel %vm279_vm3, %v276_v35, %v278_v34 }
  0x8c   : > { %v294_v39 = vand.u32 %v1308_v29, %v281_v37  ;;  %v421_v41 = vpop.permute.xlu2 %420 }
  0x8d   : > { %334 = vmatpush.bf16.msra.mxu2 %v297_v36  ;;  %v424_v42 = vsel %vm422_vm4, %v419_v33, %v421_v41  ;;  %v435_v49 = vand.u32 %v421_v41, %v1308_v29 }
  0x8e   : > { %320 = vmatpush.bf16.msra.mxu1 %v294_v39  ;;  %v432_v43 = vand.u32 %v424_v42, %v1308_v29  ;;  %v252_v42 = vld [vmem:[%s1424_s2] sm:$0xff] }
  0x90   : > { %1131 = vmatmul.msk.bf16.vlgmr.msra.gmra.mxu2 %vm282_vm2, %v1206_v40  ;;  %458 = vmatpush.bf16.msrb.mxu3 %v432_v43  ;;  %v253_v43 = vld [vmem:[%s1424_s2 + $0x8] sm:$0xff] }
  0x91   : > { %1130 = vmatmul.msk.bf16.vlgmr.msra.gmra.mxu1 %vm282_vm2, %v1206_v40 }
  0x92   : > { %394 = vmatpush.bf16.msrb.mxu1 %v357_v38  ;;  %v274_v45 = vpop.permute.xlu0 %273 }
  0x93   : > { %v280_v46 = vsel %vm279_vm3, %v274_v45, %v276_v35  ;;  %1146 = vmatmul.msk.bf16.vlgmr.msrb.gmra.mxu3 %vm282_vm2, %v1207_v44  ;;  %v1212_v45 = vld [vmem:[%s1423_s1 + $0x38] sm:$0xff] }
  0x94   : > { %v291_v48 = vand.u32 %v1308_v29, %v280_v46  ;;  %v501_v53 = vpop.permute.xlu2 %500 }
  0x96   : > { %306 = vmatpush.bf16.msra.mxu0 %v291_v48 }
  0x99   : > { %1129 = vmatmul.msk.bf16.vlgmr.msra.gmra.mxu0 %vm282_vm2, %v1206_v40 }
  0x9a   : > { %380 = vmatpush.bf16.msrb.mxu0 %v355_v47 }
  0x9c   : > { %v417_v50 = vpop.permute.xlu1 %416  ;;  %v587_v62 = vpop.permute.xlu2 %586 }
  0x9d   : > { %v423_v51 = vsel %vm422_vm4, %v417_v50, %v419_v33 }
  0x9e   : > { %472 = vmatpush.bf16.msra.mxu0 %v435_v49  ;;  %v429_v52 = vand.u32 %v423_v51, %v1308_v29 }
  0xa0   : > { %444 = vmatpush.bf16.msrb.mxu2 %v429_v52 }
  0xa1   : > { %1138 = vmatmul.msk.bf16.vlgmr.msrb.gmra.mxu1 %vm282_vm2, %v1205_v32 }
  0xa3   : > { %1145 = vmatmul.msk.bf16.vlgmr.msrb.gmra.mxu2 %vm282_vm2, %v1207_v44 }
  0xa5   : > { %v505_v54 = vpop.permute.xlu1 %504 }
  0xa6   : > { %v519_v55 = vand.u32 %v505_v54, %v1308_v29  ;;  %v503_v56 = vpop.permute.xlu0 %502 }
  0xa7   : > { %v508_v57 = vsel %vm506_vm5, %v503_v56, %v505_v54  ;;  %v507_v58 = vsel %vm506_vm5, %v501_v53, %v503_v56 }
  0xa8   : > { %v516_v59 = vand.u32 %v508_v57, %v1308_v29  ;;  %v513_v60 = vand.u32 %v507_v58, %v1308_v29  ;;  %556 = vmatpush.bf16.msra.mxu3 %v519_v55  ;;  %v753_v6 = vpop.permute.xlu2 %752 }
  0xa9   : > { %1137 = vmatmul.msk.bf16.vlgmr.msrb.gmra.mxu0 %vm282_vm2, %v1205_v32  ;;  %v368_v46 = vpop.f32.mrf.mxu3 }
  0xaa   : > { %528 = vmatpush.bf16.msra.mxu1 %v513_v60  ;;  %542 = vmatpush.bf16.msra.mxu2 %v516_v59 }
  0xab   : > { %1156 = vmatmul.msk.bf16.vlgmr.msra.gmra.mxu3 %vm282_vm2, %v1208_v61 }
  0xae   : > { %v589_v63 = vpop.permute.xlu0 %588 }
  0xaf   : > { %v603_v0 = vand.u32 %v589_v63, %v1308_v29  ;;  %v585_v1 = vpop.permute.xlu1 %584  ;;  %v592_v2 = vsel %vm590_vm6, %v587_v62, %v589_v63 }
  0xb0   : > { %v591_v3 = vsel %vm590_vm6, %v585_v1, %v587_v62  ;;  %v600_v4 = vand.u32 %v592_v2, %v1308_v29  ;;  %v757_v14 = vpop.permute.xlu2 %756 }
  0xb1   : > { %1154 = vmatmul.msk.bf16.vlgmr.msra.gmra.mxu1 %vm282_vm2, %v1208_v61  ;;  %v597_v5 = vand.u32 %v591_v3, %v1308_v29  ;;  %640 = vmatpush.bf16.msrb.mxu2 %v603_v0  ;;  %v771_v23 = vand.u32 %v757_v14, %v1308_v29  ;;  %v370_v52 = vpop.f32.mrf.mxu3 }
  0xb2   : > { %626 = vmatpush.bf16.msrb.mxu1 %v600_v4 }
  0xb3   : > { %1155 = vmatmul.msk.bf16.vlgmr.msra.gmra.mxu2 %vm282_vm2, %v1208_v61  ;;  %612 = vmatpush.bf16.msrb.mxu0 %v597_v5 }
  0xb7   : > { %v671_v7 = vpop.permute.xlu1 %670  ;;  %v669_v8 = vpop.permute.xlu0 %668 }
  0xb8   : > { %v675_v9 = vsel %vm674_vm7, %v669_v8, %v671_v7  ;;  %v837_v24 = vpop.permute.xlu2 %836 }
  0xb9   : > { %1147 = vmatmul.msk.bf16.vlgmr.msra.gmra.mxu0 %vm282_vm2, %v1207_v44  ;;  %v681_v10 = vand.u32 %v675_v9, %v1308_v29  ;;  %v1252_v44 = vmov 0  }
  0xba   : > { %1234 = vset.pattern.permute.xlu1 %v1252_v44  ;;  %1233 = vset.pattern.permute.xlu0 %v1252_v44 }
  0xbb   : > { %696 = vmatpush.bf16.msrb.mxu3 %v681_v10  ;;  %991 = vperm.xlu1 %1234, %v252_v42  }
  0xbc   : > { %996 = vperm.xlu0 %1233, %v253_v43  }
  0xbe   : > { %1172 = vmatmul.msk.bf16.vlgmr.msrb.gmra.mxu3 %vm282_vm2, %v1210_v11 }
  0xbf   : > { %v673_v13 = vpop.permute.xlu1 %672 }
  0xc0   : > { %v676_v15 = vsel %vm674_vm7, %v671_v7, %v673_v13  ;;  %v687_v16 = vand.u32 %v673_v13, %v1308_v29  ;;  %v923_v34 = vpop.permute.xlu2 %922 }
  0xc1   : > { %1164 = vmatmul.msk.bf16.vlgmr.msrb.gmra.mxu1 %vm282_vm2, %v1209_v12  ;;  %v684_v17 = vand.u32 %v676_v15, %v1308_v29  ;;  %v755_v18 = vpop.permute.xlu0 %754 }
  0xc2   : > { %v759_v19 = vsel %vm758_vm8, %v753_v6, %v755_v18  ;;  %v760_v20 = vsel %vm758_vm8, %v755_v18, %v757_v14  ;;  %724 = vmatpush.bf16.msra.mxu1 %v687_v16 }
  0xc3   : > { %1165 = vmatmul.msk.bf16.vlgmr.msrb.gmra.mxu2 %vm282_vm2, %v1209_v12  ;;  %v765_v21 = vand.u32 %v759_v19, %v1308_v29  ;;  %v768_v22 = vand.u32 %v760_v20, %v1308_v29  ;;  %710 = vmatpush.bf16.msra.mxu0 %v684_v17 }
  0xc5   : > { %780 = vmatpush.bf16.msra.mxu2 %v765_v21  ;;  %794 = vmatpush.bf16.msra.mxu3 %v768_v22 }
  0xc9   : > { %1163 = vmatmul.msk.bf16.vlgmr.msrb.gmra.mxu0 %vm282_vm2, %v1209_v12  ;;  %v841_v25 = vpop.permute.xlu1 %840 }
  0xca   : > { %v855_v26 = vand.u32 %v841_v25, %v1308_v29  ;;  %v839_v27 = vpop.permute.xlu0 %838  ;;  %808 = vmatpush.bf16.msrb.mxu0 %v771_v23 }
  0xcb   : > { %v844_v28 = vsel %vm842_vm9, %v839_v27, %v841_v25  ;;  %v843_v30 = vsel %vm842_vm9, %v837_v24, %v839_v27 }
  0xcc   : > { %v852_v32 = vand.u32 %v844_v28, %v1308_v29  ;;  %v849_v33 = vand.u32 %v843_v30, %v1308_v29  ;;  %892 = vmatpush.bf16.msrb.mxu3 %v855_v26 }
  0xce   : > { %1182 = vmatmul.msk.bf16.vlgmr.msra.gmra.mxu3 %vm282_vm2, %v1211_v31  ;;  %864 = vmatpush.bf16.msrb.mxu1 %v849_v33 }
  0xcf   : > { %878 = vmatpush.bf16.msrb.mxu2 %v852_v32 }
  0xd1   : > { %1174 = vmatmul.msk.bf16.vlgmr.msra.gmra.mxu1 %vm282_vm2, %v1210_v11 }
  0xd2   : > { %v925_v35 = vpop.permute.xlu0 %924  ;;  %v921_v38 = vpop.permute.xlu1 %920 }
  0xd3   : > { %1181 = vmatmul.msk.bf16.vlgmr.msra.gmra.mxu2 %vm282_vm2, %v1211_v31  ;;  %v939_v36 = vand.u32 %v925_v35, %v1308_v29  ;;  %v928_v37 = vsel %vm926_vm10, %v923_v34, %v925_v35  ;;  %v927_v40 = vsel %vm926_vm10, %v921_v38, %v923_v34 }
  0xd4   : > { %v936_v39 = vand.u32 %v928_v37, %v1308_v29  ;;  %v933_v41 = vand.u32 %v927_v40, %v1308_v29  ;;  %v1213_v29 = vld [vmem:[%s1423_s1 + $0x40] sm:$0xff] }
  0xd5   : > { %976 = vmatpush.bf16.msra.mxu2 %v939_v36 }
  0xd6   : > { %962 = vmatpush.bf16.msra.mxu1 %v936_v39 }
  0xd9   : > { %1173 = vmatmul.msk.bf16.vlgmr.msra.gmra.mxu0 %vm282_vm2, %v1210_v11 }
  0xda   : > { %948 = vmatpush.bf16.msra.mxu0 %v933_v41 }
  0xde   : > { %1192 = vmatmul.msk.bf16.vlgmr.msrb.gmra.mxu3 %vm282_vm2, %v1212_v45 }
  0xe1   : > { %1190 = vmatmul.msk.bf16.vlgmr.msrb.gmra.mxu1 %vm282_vm2, %v1212_v45 }
  0xe3   : > { %1191 = vmatmul.msk.bf16.vlgmr.msrb.gmra.mxu2 %vm282_vm2, %v1212_v45 }
  0xe9   : > { %1183 = vmatmul.msk.bf16.vlgmr.msrb.gmra.mxu0 %vm282_vm2, %v1211_v31 }
  0xf1   : > { %1200 = vmatmul.msk.bf16.vlgmr.msra.gmra.mxu1 %vm282_vm2, %v1213_v29 }
  0xf3   : > { %1201 = vmatmul.msk.bf16.vlgmr.msra.gmra.mxu2 %vm282_vm2, %v1213_v29 }
  0xf9   : > { %1199 = vmatmul.msk.bf16.vlgmr.msra.gmra.mxu0 %vm282_vm2, %v1213_v29 }
 0x10e   : > { %v322_v47 = vpop.f32.mrf.mxu1 }
 0x113   : > { %v336_v48 = vpop.f32.mrf.mxu2 }
 0x116   : > { %v308_v49 = vpop.f32.mrf.mxu0  ;;  %v324_v50 = vpop.f32.mrf.mxu1 }
 0x117   : > { %v369_v51 = vadd.f32 %v368_v46, %v308_v49  ;;  %v460_v58 = vpop.f32.mrf.mxu3 }
 0x11b   : > { %v338_v53 = vpop.f32.mrf.mxu2 }
 0x11e   : > { %v310_v54 = vpop.f32.mrf.mxu0  ;;  %v396_v55 = vpop.f32.mrf.mxu1 }
 0x11f   : > { %v371_v56 = vadd.f32 %v370_v52, %v310_v54  ;;  %v397_v57 = vadd.f32 %v396_v55, %v336_v48  ;;  %v462_v1 = vpop.f32.mrf.mxu3 }
 0x126   : > { %v446_v59 = vpop.f32.mrf.mxu2  ;;  %v382_v60 = vpop.f32.mrf.mxu0 }
 0x127   : > { %v479_v61 = vadd.f32 %v446_v59, %v369_v51  ;;  %v383_v62 = vadd.f32 %v382_v60, %v322_v47  ;;  %v398_v63 = vpop.f32.mrf.mxu1 }
 0x128   : > { %v399_v0 = vadd.f32 %v398_v63, %v338_v53 }
 0x129   : > { %v480_v31 = vadd.f32 %v460_v58, %v383_v62 }
 0x12d   : > { %v992_v60 = vpop.permute.xlu1 %991 }
 0x12e   : > { %v448_v2 = vpop.f32.mrf.mxu2  ;;  %v384_v3 = vpop.f32.mrf.mxu0 }
 0x12f   : > { %v482_v4 = vadd.f32 %v448_v2, %v371_v56  ;;  %v385_v5 = vadd.f32 %v384_v3, %v324_v50  ;;  %v530_v6 = vpop.f32.mrf.mxu1  ;;  %v558_v7 = vpop.f32.mrf.mxu3 }
 0x130   : > { %v563_v40 = vadd.f32 %v530_v6, %v479_v61 }
 0x131   : > { %v483_v41 = vadd.f32 %v462_v1, %v385_v5  ;;  %v251_v5 = vld [vmem:[%s1425_s3] sm:$0x7] }
 0x136   : > { %v544_v8 = vpop.f32.mrf.mxu2  ;;  %v474_v9 = vpop.f32.mrf.mxu0 }
 0x137   : > { %v532_v10 = vpop.f32.mrf.mxu1  ;;  %v560_v11 = vpop.f32.mrf.mxu3  ;;  %v564_v32 = vadd.f32 %v544_v8, %v480_v31  ;;  %v481_v36 = vadd.f32 %v474_v9, %v397_v57 }
 0x138   : > { %v566_v54 = vadd.f32 %v532_v10, %v482_v4 }
 0x139   : > { %v565_v42 = vadd.f32 %v558_v7, %v481_v36 }
 0x13e   : > { %v546_v12 = vpop.f32.mrf.mxu2  ;;  %v476_v13 = vpop.f32.mrf.mxu0 }
 0x13f   : > { %v628_v14 = vpop.f32.mrf.mxu1  ;;  %v567_v43 = vadd.f32 %v546_v12, %v483_v41  ;;  %v484_v46 = vadd.f32 %v476_v13, %v399_v0 }
 0x140   : > { %v648_v37 = vadd.f32 %v628_v14, %v564_v32  ;;  %v1012_v14 = vperm.slane %v251_v5, 0 }
 0x141   : > { %v698_v18 = vpop.f32.mrf.mxu3  ;;  %v568_v59 = vadd.f32 %v560_v11, %v484_v46 }
 0x146   : > { %v642_v15 = vpop.f32.mrf.mxu2  ;;  %v614_v16 = vpop.f32.mrf.mxu0 }
 0x147   : > { %v630_v17 = vpop.f32.mrf.mxu1  ;;  %v649_v44 = vadd.f32 %v642_v15, %v565_v42  ;;  %v647_v45 = vadd.f32 %v614_v16, %v563_v40  ;;  %v1013_v15 = vperm.slane %v251_v5, 1  ;;  %v1014_v16 = vperm.slane %v251_v5, 2 }
 0x148   : > { %v651_v49 = vadd.f32 %v630_v17, %v567_v43 }
 0x149   : > { %v700_v22 = vpop.f32.mrf.mxu3  ;;  %v731_v55 = vadd.f32 %v698_v18, %v647_v45 }
 0x14e   : > { %v644_v19 = vpop.f32.mrf.mxu2  ;;  %v616_v20 = vpop.f32.mrf.mxu0 }
 0x14f   : > { %v726_v21 = vpop.f32.mrf.mxu1  ;;  %v650_v61 = vadd.f32 %v616_v20, %v566_v54  ;;  %v652_v63 = vadd.f32 %v644_v19, %v568_v59 }
 0x150   : > { %v733_v50 = vadd.f32 %v726_v21, %v649_v44 }
 0x151   : > { %v796_v26 = vpop.f32.mrf.mxu3  ;;  %v734_v8 = vadd.f32 %v700_v22, %v650_v61 }
 0x156   : > { %v782_v23 = vpop.f32.mrf.mxu2  ;;  %v712_v24 = vpop.f32.mrf.mxu0 }
 0x157   : > { %v728_v25 = vpop.f32.mrf.mxu1  ;;  %v732_v39 = vadd.f32 %v712_v24, %v648_v37  ;;  %v815_v62 = vadd.f32 %v782_v23, %v731_v55  ;;  %v997_v24 = vpop.permute.xlu0 %996 }
 0x158   : > { %v736_v6 = vadd.f32 %v728_v25, %v652_v63 }
 0x159   : > { %v798_v33 = vpop.f32.mrf.mxu3  ;;  %v816_v29 = vadd.f32 %v796_v26, %v732_v39 }
 0x15e   : > { %v784_v27 = vpop.f32.mrf.mxu2  ;;  %v714_v28 = vpop.f32.mrf.mxu0 }
 0x15f   : > { %v866_v30 = vpop.f32.mrf.mxu1  ;;  %v735_v56 = vadd.f32 %v714_v28, %v651_v49  ;;  %v818_v23 = vadd.f32 %v784_v27, %v734_v8 }
 0x160   : > { %v899_v1 = vadd.f32 %v866_v30, %v815_v62 }
 0x161   : > { %v894_v52 = vpop.f32.mrf.mxu3  ;;  %v819_v2 = vadd.f32 %v798_v33, %v735_v56 }
 0x166   : > { %v880_v34 = vpop.f32.mrf.mxu2  ;;  %v810_v35 = vpop.f32.mrf.mxu0 }
 0x167   : > { %v868_v38 = vpop.f32.mrf.mxu1  ;;  %v900_v51 = vadd.f32 %v880_v34, %v816_v29  ;;  %v817_v57 = vadd.f32 %v810_v35, %v733_v50 }
 0x168   : > { %v902_v28 = vadd.f32 %v868_v38, %v818_v23 }
 0x169   : > { %v901_v0 = vadd.f32 %v894_v52, %v817_v57  ;;  %v896_v18 = vpop.f32.mrf.mxu3 }
 0x16e   : > { %v882_v47 = vpop.f32.mrf.mxu2  ;;  %v812_v48 = vpop.f32.mrf.mxu0 }
 0x16f   : > { %v964_v53 = vpop.f32.mrf.mxu1  ;;  %v903_v9 = vadd.f32 %v882_v47, %v819_v2  ;;  %v820_v13 = vadd.f32 %v812_v48, %v736_v6 }
 0x170   : > { %v984_v58 = vadd.f32 %v964_v53, %v900_v51  ;;  %v1035_v51 = vld [vmem:[%s1426_s4] sm:$0xff] }
 0x171   : > { %v904_v30 = vadd.f32 %v896_v18, %v820_v13  ;;  %v1036_v53 = vld [vmem:[%s1427_s5] sm:$0xff] }
 0x172   : > { %v1000_v3 = vadd.f32 %v992_v60, %v984_v58 }
 0x174   : > { %v1006_v17 = vmax.f32 %v1000_v3, 0.0 }
 0x176   : > { %v978_v7 = vpop.f32.mrf.mxu2  ;;  %v950_v4 = vpop.f32.mrf.mxu0  ;;  %v1019_v32 = vmul.f32 %v1013_v15, %v1006_v17 }
 0x177   : > { %v985_v10 = vadd.f32 %v978_v7, %v901_v0  ;;  %v983_v12 = vadd.f32 %v950_v4, %v899_v1  ;;  %v966_v11 = vpop.f32.mrf.mxu1 }
 0x178   : > { %v987_v21 = vadd.f32 %v966_v11, %v903_v9 }
 0x179   : > { %v1001_v19 = vadd.f32 %v992_v60, %v985_v10  ;;  %v999_v20 = vadd.f32 %v992_v60, %v983_v12 }
 0x17a   : > { %v1003_v31 = vadd.f32 %v997_v24, %v987_v21 }
 0x17b   : > { %v1007_v26 = vmax.f32 %v1001_v19, 0.0  ;;  %v1005_v25 = vmax.f32 %v999_v20, 0.0 }
 0x17c   : > { %v1009_v41 = vmax.f32 %v1003_v31, 0.0 }
 0x17d   : > { %v1018_v22 = vmul.f32 %v1012_v14, %v1005_v25  ;;  %v1020_v33 = vmul.f32 %v1014_v16, %v1007_v26 }
 0x17e   : > { %v980_v34 = vpop.f32.mrf.mxu2  ;;  %v952_v35 = vpop.f32.mrf.mxu0  ;;  %v1022_v38 = vmul.f32 %v1013_v15, %v1009_v41 }
 0x17f   : > { %v988_v36 = vadd.f32 %v980_v34, %v904_v30  ;;  %v986_v37 = vadd.f32 %v952_v35, %v902_v28  ;;  %v1024_v39 = vadd.f32 %v1019_v32, %v1018_v22  ;;  %v1026_v40 = vsel %vm1025_vm11, %v1020_v33, 0.0 }
 0x181   : > { %v1004_v42 = vadd.f32 %v997_v24, %v988_v36  ;;  %v1002_v27 = vadd.f32 %v997_v24, %v986_v37  ;;  %v1027_v43 = vadd.f32 %v1026_v40, %v1024_v39 }
 0x183   : > { %v1010_v44 = vmax.f32 %v1004_v42, 0.0  ;;  %v1008_v45 = vmax.f32 %v1002_v27, 0.0  ;;  %1028 = vadd.xlane.f32.xlu1 %v1027_v43 }
 0x185   : > { %v1021_v29 = vmul.f32 %v1012_v14, %v1008_v45  ;;  %v1023_v46 = vmul.f32 %v1014_v16, %v1010_v44 }
 0x187   : > { %v1030_v47 = vadd.f32 %v1022_v38, %v1021_v29  ;;  %v1031_v48 = vsel %vm1025_vm11, %v1023_v46, 0.0 }
 0x189   : > { %v1032_v49 = vadd.f32 %v1031_v48, %v1030_v47 }
 0x18b   : > { %1033 = vadd.xlane.f32.xlu2 %v1032_v49 }
 0x1f6   : > { %v1029_v52 = vpop.xlane.xlu1 %1028 }
 0x1fe   : > { %v1034_v50 = vpop.xlane.xlu2 %1033 }
 0x1ff   : > { %1055 = vmatpush.msra.mxu3 %v1034_v50 }
 0x201   : > { %1056 = vmatpush.msra.mxu3 %v1029_v52 }
 0x202   : > { %1202 = vmatmul.msk.f32.vlgmr.msra.gmra.mxu3 %vm1037_vm12, %v1035_v51 }
 0x285   : > { %v1058_v54 = vpop.f32.mrf.mxu3 }
 0x286   : > { %v1059_v55 = vadd.f32 %v1058_v54, %v1036_v53 }
 0x288   : > { %1062 = vst.msk [vmem:[%s249_s20] sm:$0xff] %vm1061_vm13, %v1059_v55 }
 0x289 PF: > { %s16_s21 = sadd.s32 1, %s1241_s21  }
 0x28a   : > { %p13_p4 = scmp.ge.s32.totalorder %s16_s21, 4  }
 0x28c   :  { %15 = sbr.rel (!%p13_p4) target bundleno = 1 (0x1), region = 82 }

</bundles_post_ra>
